<compile_context>
chip_gen: v6e
topology: v6e:2x2x1
jax: 0.10.0
libtpu: 0.0.40
codegen_flags: <defaults>
</compile_context>

<pallas_src>
import jax
import jax.numpy as jnp
from jax.experimental import pallas as pl
from jax.experimental.pallas import tpu as pltpu  # noqa: F401


def lstm_kernel(x_ref, w_ref, b_ref, state_ref, logits_ref, state_out_ref):
    """Whole LSTM recurrence in one invocation; all operands resident in VMEM."""
    T, I = x_ref.shape
    H = state_ref.shape[1]

    # Packed parameter slab (single DMA): rows [0:I) = W_ih^T, rows [I:I+H) =
    # W_hh^T.  I and H are multiples of the bf16 sublane tile (16), so these
    # static slices are tile-aligned views, not repack copies.
    wih = w_ref[0:I, :]                                     # (I, 4H)  bf16
    whh = w_ref[I:I + H, :]                                 # (H, 4H)  bf16

    # Hoisted input projection: ONE (T,I)@(I,4H) MXU matmul for the whole
    # sequence, f32 accumulation.  For T=8, H=32 the (T,4H)=(8,128) f32 result
    # is exactly one vreg, so the per-step row reads below are cheap extracts.
    xw = jnp.dot(x_ref[...], wih,
                 preferred_element_type=jnp.float32) + b_ref[...]   # (T,4H) f32

    h = state_ref[0:1, :]                                   # (1, H) f32
    c = state_ref[1:2, :]                                   # (1, H) f32

    # TODO(synk): hold W_hh staged in the MXU explicitly with
    # pltpu.matmul_push_rhs / matmul_acc_lhs / matmul_pop so the (H,4H) block
    # is pushed once instead of once per unrolled step; kept as jnp.dot here
    # because the explicit-staging path is not guaranteed to lower for a
    # (1,H) LHS at these tiny shapes.
    rows = []
    for t in range(T):   # static trip count -> fully unrolled for LLO overlap
        # Only per-step MXU work: (1,H)@(H,4H), bf16 operands, f32 accumulate.
        gates = xw[t:t + 1, :] + jnp.dot(
            h.astype(jnp.bfloat16), whh,
            preferred_element_type=jnp.float32)             # (1, 4H) f32

        # Single EUP pass per step: the g-gate columns of W/b were pre-scaled
        # by 2 in prepare_params, so tanh(g) == 2*sigmoid(2g) - 1.
        sig = jax.nn.sigmoid(gates)
        i_g = sig[:, 0 * H:1 * H]
        f_g = sig[:, 1 * H:2 * H]
        g_g = 2.0 * sig[:, 2 * H:3 * H] - 1.0               # == tanh(g), VPU fixup
        o_g = sig[:, 3 * H:4 * H]

        c = f_g * c + i_g * g_g
        h = o_g * jnp.tanh(c)
        rows.append(h)

    # One contiguous (T, H) block store instead of T masked per-row stores.
    logits_ref[...] = jnp.concatenate(rows, axis=0)
    # Persistent state packed as a single (2, H) output (row 0 = h, row 1 = c),
    # aliased to its input buffer by the wrapper.
    state_out_ref[...] = jnp.concatenate([h, c], axis=0)


def prepare_params(w_ih, w_hh, b_ih, b_hh, hx, cx):
    """One-time parameter plumbing, outside the jitted forward:
       * transpose weights so 4H sits on the lane axis,
       * fold the two biases,
       * pre-scale the g-gate columns by 2 (tanh == 2*sigmoid(2x)-1 trick),
       * pack W_ih^T / W_hh^T into one bf16 slab and (h, c) into one (2,H)."""
    H = hx.shape[-1]
    scale = jnp.ones((4 * H,), jnp.float32).at[2 * H:3 * H].set(2.0)

    wih_t = jnp.asarray(w_ih, jnp.float32).T * scale        # (I, 4H)
    whh_t = jnp.asarray(w_hh, jnp.float32).T * scale        # (H, 4H)
    w_slab = jnp.concatenate([wih_t, whh_t], axis=0).astype(jnp.bfloat16)

    b = ((jnp.asarray(b_ih, jnp.float32) + jnp.asarray(b_hh, jnp.float32))
         * scale).reshape(1, 4 * H)                         # (1, 4H) f32

    state = jnp.concatenate(
        [jnp.asarray(hx, jnp.float32).reshape(1, H),
         jnp.asarray(cx, jnp.float32).reshape(1, H)], axis=0)   # (2, H) f32
    return w_slab, b, state


@jax.jit
def lstm_categorical_forward(x, w_slab, b, state):
    """Pallas wrapper. Returns (logits, new_state) with new_state = [h; c].

    x      : (T, I)  float32
    w_slab : (I+H, 4H) bf16   (pre-transposed, g-columns pre-scaled)
    b      : (1, 4H) f32      (= b_ih + b_hh, g-columns pre-scaled)
    state  : (2, H)  f32      (row 0 = h, row 1 = c)
    """
    T = x.shape[0]
    H = state.shape[-1]
    x_bf = x.astype(jnp.bfloat16)        # MXU-native operand dtype

    logits, new_state = pl.pallas_call(
        lstm_kernel,
        out_shape=(jax.ShapeDtypeStruct((T, H), jnp.float32),
                   jax.ShapeDtypeStruct((2, H), jnp.float32)),
        # Single invocation with whole-array (default) blocks: every operand
        # fits comfortably in VMEM (<40 KB total), so no grid/tiling is
        # needed.  The persistent-state input (index 3) is aliased to the
        # state output (index 1) so the carry buffer can be reused.
        input_output_aliases={3: 1},
    )(x_bf, w_slab, b, state)

    return logits, new_state


def lstm_reference(x, w_ih, w_hh, b_ih, b_hh, hx, cx):
    """Pure-JAX f32 reference (PyTorch gate order i,f,g,o)."""
    H = hx.shape[-1]
    h0 = hx.reshape(H)
    c0 = cx.reshape(H)
    b = b_ih + b_hh

    def step(carry, x_t):
        h, c = carry
        gates = w_ih @ x_t + w_hh @ h + b
        i_g = jax.nn.sigmoid(gates[0 * H:1 * H])
        f_g = jax.nn.sigmoid(gates[1 * H:2 * H])
        g_g = jnp.tanh(gates[2 * H:3 * H])
        o_g = jax.nn.sigmoid(gates[3 * H:4 * H])
        c_new = f_g * c + i_g * g_g
        h_new = o_g * jnp.tanh(c_new)
        return (h_new, c_new), h_new

    (h_fin, c_fin), outs = jax.lax.scan(step, (h0, c0), x)
    return outs, h_fin.reshape(1, 1, H), c_fin.reshape(1, 1, H)


def init_params(key, num_inputs, num_outputs):
    """Deterministic init matching the module's __init__/reset():
       xavier_normal_ on W_ih / W_hh, PyTorch-default uniform biases,
       randn hx/cx."""
    I, H = num_inputs, num_outputs
    k1, k2, k3, k4, k5, k6 = jax.random.split(key, 6)

    def xavier_normal(k, shape):
        fan_out, fan_in = shape
        std = jnp.sqrt(2.0 / (fan_in + fan_out))
        return std * jax.random.normal(k, shape, jnp.float32)

    w_ih = xavier_normal(k1, (4 * H, I))
    w_hh = xavier_normal(k2, (4 * H, H))
    bound = 1.0 / jnp.sqrt(jnp.float32(H))
    b_ih = jax.random.uniform(k3, (4 * H,), jnp.float32, -bound, bound)
    b_hh = jax.random.uniform(k4, (4 * H,), jnp.float32, -bound, bound)
    hx = jax.random.normal(k5, (1, 1, H), jnp.float32)
    cx = jax.random.normal(k6, (1, 1, H), jnp.float32)
    return w_ih, w_hh, b_ih, b_hh, hx, cx


if __name__ == "__main__":
    num_inputs = 16    # LSTM input feature size
    num_outputs = 32   # LSTM hidden size == number of categorical logits
    seq_len = 8

    key = jax.random.PRNGKey(0)
    kp, kx = jax.random.split(key)
    w_ih, w_hh, b_ih, b_hh, hx, cx = init_params(kp, num_inputs, num_outputs)
    x = jax.random.normal(kx, (seq_len, num_inputs), jnp.float32)

    # Parameter plumbing done once, outside the jitted forward.
    w_slab, b, state = prepare_params(w_ih, w_hh, b_ih, b_hh, hx, cx)

    logits, new_state = lstm_categorical_forward(x, w_slab, b, state)
    jax.block_until_ready((logits, new_state))

    h_new = new_state[0:1].reshape(1, 1, num_outputs)
    c_new = new_state[1:2].reshape(1, 1, num_outputs)

    ref_logits, ref_h, ref_c = lstm_reference(x, w_ih, w_hh, b_ih, b_hh, hx, cx)

    assert logits.shape == (seq_len, num_outputs)
    assert h_new.shape == (1, 1, num_outputs)
    assert c_new.shape == (1, 1, num_outputs)
    # Tolerance relaxed from 1e-5 to 3e-2: the kernel uses bf16 MXU operands
    # (per the v5e/v6e review item) while the reference is pure f32; gate math
    # and the h/c state remain f32, so observed error is O(1e-3).
    assert jnp.allclose(logits, ref_logits, atol=3e-2, rtol=3e-2)
    assert jnp.allclose(h_new, ref_h, atol=3e-2, rtol=3e-2)
    assert jnp.allclose(c_new, ref_c, atol=3e-2, rtol=3e-2)

    # TODO(synk): CustomFixedCategorical (sampling / log_prob wrapper) has no
    # kernel-level equivalent; the kernel returns its logits, which fully
    # determine the distribution.
    print("KERNEL_OK")
</pallas_src>

<mosaic_0001>
module attributes {stable_mosaic.version = 11 : i64} {
  func.func @lstm_kernel(%arg0: memref<8x16xbf16, #tpu.memory_space<vmem>>, %arg1: memref<48x128xbf16, #tpu.memory_space<vmem>>, %arg2: memref<1x128xf32, #tpu.memory_space<vmem>>, %arg3: memref<2x32xf32, #tpu.memory_space<vmem>>, %arg4: memref<8x32xf32, #tpu.memory_space<vmem>>, %arg5: memref<2x32xf32, #tpu.memory_space<vmem>>) attributes {dimension_semantics = [], scalar_prefetch = 0 : i64, scratch_operands = 0 : i64, tpu.core_type = #tpu.core_type<tc>} {
    %c0 = arith.constant 0 : index
    %c0_0 = arith.constant 0 : index
    %0 = vector.load %arg1[%c0, %c0_0] : memref<48x128xbf16, #tpu.memory_space<vmem>>, vector<16x128xbf16>
    %c16 = arith.constant 16 : index
    %c0_1 = arith.constant 0 : index
    %1 = vector.load %arg1[%c16, %c0_1] : memref<48x128xbf16, #tpu.memory_space<vmem>>, vector<32x128xbf16>
    %c0_2 = arith.constant 0 : index
    %c0_3 = arith.constant 0 : index
    %2 = vector.load %arg0[%c0_2, %c0_3] : memref<8x16xbf16, #tpu.memory_space<vmem>>, vector<8x16xbf16>
    %cst = arith.constant dense<0.000000e+00> : vector<8x128xf32>
    %3 = tpu.matmul %2, %0, %cst {dimension_numbers = #tpu.dot_dimension_numbers<[1], [0], [0], [1], [0, 0, 1, 1], [], []>} : vector<8x16xbf16>, vector<16x128xbf16>, vector<8x128xf32> -> vector<8x128xf32>
    %c0_4 = arith.constant 0 : index
    %c0_5 = arith.constant 0 : index
    %4 = vector.load %arg2[%c0_4, %c0_5] : memref<1x128xf32, #tpu.memory_space<vmem>>, vector<1x128xf32>
    %5 = vector.broadcast %4 : vector<1x128xf32> to vector<8x128xf32>
    %6 = arith.addf %3, %5 : vector<8x128xf32>
    %c0_6 = arith.constant 0 : index
    %c0_7 = arith.constant 0 : index
    %7 = vector.load %arg3[%c0_6, %c0_7] : memref<2x32xf32, #tpu.memory_space<vmem>>, vector<1x32xf32>
    %c1 = arith.constant 1 : index
    %c0_8 = arith.constant 0 : index
    %8 = vector.load %arg3[%c1, %c0_8] : memref<2x32xf32, #tpu.memory_space<vmem>>, vector<1x32xf32>
    %9 = vector.extract_strided_slice %6 {offsets = [0, 0], sizes = [1, 128], strides = [1, 1]} : vector<8x128xf32> to vector<1x128xf32>
    %10 = arith.truncf %7 : vector<1x32xf32> to vector<1x32xbf16>
    %cst_9 = arith.constant dense<0.000000e+00> : vector<1x128xf32>
    %11 = tpu.matmul %10, %1, %cst_9 {dimension_numbers = #tpu.dot_dimension_numbers<[1], [0], [0], [1], [0, 0, 1, 1], [], []>} : vector<1x32xbf16>, vector<32x128xbf16>, vector<1x128xf32> -> vector<1x128xf32>
    %12 = arith.addf %9, %11 : vector<1x128xf32>
    %13 = arith.negf %12 : vector<1x128xf32>
    %14 = math.exp %13 : vector<1x128xf32>
    %cst_10 = arith.constant 1.000000e+00 : f32
    %15 = vector.broadcast %cst_10 : f32 to vector<1x128xf32>
    %16 = arith.addf %15, %14 : vector<1x128xf32>
    %17 = arith.divf %15, %16 : vector<1x128xf32>
    %18 = vector.extract_strided_slice %17 {offsets = [0, 0], sizes = [1, 32], strides = [1, 1]} : vector<1x128xf32> to vector<1x32xf32>
    %19 = vector.extract_strided_slice %17 {offsets = [0, 32], sizes = [1, 32], strides = [1, 1]} : vector<1x128xf32> to vector<1x32xf32>
    %20 = vector.extract_strided_slice %17 {offsets = [0, 64], sizes = [1, 32], strides = [1, 1]} : vector<1x128xf32> to vector<1x32xf32>
    %cst_11 = arith.constant 2.000000e+00 : f32
    %21 = vector.broadcast %cst_11 : f32 to vector<1x32xf32>
    %22 = arith.mulf %21, %20 : vector<1x32xf32>
    %cst_12 = arith.constant 1.000000e+00 : f32
    %23 = vector.broadcast %cst_12 : f32 to vector<1x32xf32>
    %24 = arith.subf %22, %23 : vector<1x32xf32>
    %25 = vector.extract_strided_slice %17 {offsets = [0, 96], sizes = [1, 32], strides = [1, 1]} : vector<1x128xf32> to vector<1x32xf32>
    %26 = arith.mulf %19, %8 : vector<1x32xf32>
    %27 = arith.mulf %18, %24 : vector<1x32xf32>
    %28 = arith.addf %26, %27 : vector<1x32xf32>
    %29 = math.tanh %28 : vector<1x32xf32>
    %30 = arith.mulf %25, %29 : vector<1x32xf32>
    %31 = vector.extract_strided_slice %6 {offsets = [1, 0], sizes = [1, 128], strides = [1, 1]} : vector<8x128xf32> to vector<1x128xf32>
    %32 = arith.truncf %30 : vector<1x32xf32> to vector<1x32xbf16>
    %cst_13 = arith.constant dense<0.000000e+00> : vector<1x128xf32>
    %33 = tpu.matmul %32, %1, %cst_13 {dimension_numbers = #tpu.dot_dimension_numbers<[1], [0], [0], [1], [0, 0, 1, 1], [], []>} : vector<1x32xbf16>, vector<32x128xbf16>, vector<1x128xf32> -> vector<1x128xf32>
    %34 = arith.addf %31, %33 : vector<1x128xf32>
    %35 = arith.negf %34 : vector<1x128xf32>
    %36 = math.exp %35 : vector<1x128xf32>
    %cst_14 = arith.constant 1.000000e+00 : f32
    %37 = vector.broadcast %cst_14 : f32 to vector<1x128xf32>
    %38 = arith.addf %37, %36 : vector<1x128xf32>
    %39 = arith.divf %37, %38 : vector<1x128xf32>
    %40 = vector.extract_strided_slice %39 {offsets = [0, 0], sizes = [1, 32], strides = [1, 1]} : vector<1x128xf32> to vector<1x32xf32>
    %41 = vector.extract_strided_slice %39 {offsets = [0, 32], sizes = [1, 32], strides = [1, 1]} : vector<1x128xf32> to vector<1x32xf32>
    %42 = vector.extract_strided_slice %39 {offsets = [0, 64], sizes = [1, 32], strides = [1, 1]} : vector<1x128xf32> to vector<1x32xf32>
    %cst_15 = arith.constant 2.000000e+00 : f32
    %43 = vector.broadcast %cst_15 : f32 to vector<1x32xf32>
    %44 = arith.mulf %43, %42 : vector<1x32xf32>
    %cst_16 = arith.constant 1.000000e+00 : f32
    %45 = vector.broadcast %cst_16 : f32 to vector<1x32xf32>
    %46 = arith.subf %44, %45 : vector<1x32xf32>
    %47 = vector.extract_strided_slice %39 {offsets = [0, 96], sizes = [1, 32], strides = [1, 1]} : vector<1x128xf32> to vector<1x32xf32>
    %48 = arith.mulf %41, %28 : vector<1x32xf32>
    %49 = arith.mulf %40, %46 : vector<1x32xf32>
    %50 = arith.addf %48, %49 : vector<1x32xf32>
    %51 = math.tanh %50 : vector<1x32xf32>
    %52 = arith.mulf %47, %51 : vector<1x32xf32>
    %53 = vector.extract_strided_slice %6 {offsets = [2, 0], sizes = [1, 128], strides = [1, 1]} : vector<8x128xf32> to vector<1x128xf32>
    %54 = arith.truncf %52 : vector<1x32xf32> to vector<1x32xbf16>
    %cst_17 = arith.constant dense<0.000000e+00> : vector<1x128xf32>
    %55 = tpu.matmul %54, %1, %cst_17 {dimension_numbers = #tpu.dot_dimension_numbers<[1], [0], [0], [1], [0, 0, 1, 1], [], []>} : vector<1x32xbf16>, vector<32x128xbf16>, vector<1x128xf32> -> vector<1x128xf32>
    %56 = arith.addf %53, %55 : vector<1x128xf32>
    %57 = arith.negf %56 : vector<1x128xf32>
    %58 = math.exp %57 : vector<1x128xf32>
    %cst_18 = arith.constant 1.000000e+00 : f32
    %59 = vector.broadcast %cst_18 : f32 to vector<1x128xf32>
    %60 = arith.addf %59, %58 : vector<1x128xf32>
    %61 = arith.divf %59, %60 : vector<1x128xf32>
    %62 = vector.extract_strided_slice %61 {offsets = [0, 0], sizes = [1, 32], strides = [1, 1]} : vector<1x128xf32> to vector<1x32xf32>
    %63 = vector.extract_strided_slice %61 {offsets = [0, 32], sizes = [1, 32], strides = [1, 1]} : vector<1x128xf32> to vector<1x32xf32>
    %64 = vector.extract_strided_slice %61 {offsets = [0, 64], sizes = [1, 32], strides = [1, 1]} : vector<1x128xf32> to vector<1x32xf32>
    %cst_19 = arith.constant 2.000000e+00 : f32
    %65 = vector.broadcast %cst_19 : f32 to vector<1x32xf32>
    %66 = arith.mulf %65, %64 : vector<1x32xf32>
    %cst_20 = arith.constant 1.000000e+00 : f32
    %67 = vector.broadcast %cst_20 : f32 to vector<1x32xf32>
    %68 = arith.subf %66, %67 : vector<1x32xf32>
    %69 = vector.extract_strided_slice %61 {offsets = [0, 96], sizes = [1, 32], strides = [1, 1]} : vector<1x128xf32> to vector<1x32xf32>
    %70 = arith.mulf %63, %50 : vector<1x32xf32>
    %71 = arith.mulf %62, %68 : vector<1x32xf32>
    %72 = arith.addf %70, %71 : vector<1x32xf32>
    %73 = math.tanh %72 : vector<1x32xf32>
    %74 = arith.mulf %69, %73 : vector<1x32xf32>
    %75 = vector.extract_strided_slice %6 {offsets = [3, 0], sizes = [1, 128], strides = [1, 1]} : vector<8x128xf32> to vector<1x128xf32>
    %76 = arith.truncf %74 : vector<1x32xf32> to vector<1x32xbf16>
    %cst_21 = arith.constant dense<0.000000e+00> : vector<1x128xf32>
    %77 = tpu.matmul %76, %1, %cst_21 {dimension_numbers = #tpu.dot_dimension_numbers<[1], [0], [0], [1], [0, 0, 1, 1], [], []>} : vector<1x32xbf16>, vector<32x128xbf16>, vector<1x128xf32> -> vector<1x128xf32>
    %78 = arith.addf %75, %77 : vector<1x128xf32>
    %79 = arith.negf %78 : vector<1x128xf32>
    %80 = math.exp %79 : vector<1x128xf32>
    %cst_22 = arith.constant 1.000000e+00 : f32
    %81 = vector.broadcast %cst_22 : f32 to vector<1x128xf32>
    %82 = arith.addf %81, %80 : vector<1x128xf32>
    %83 = arith.divf %81, %82 : vector<1x128xf32>
    %84 = vector.extract_strided_slice %83 {offsets = [0, 0], sizes = [1, 32], strides = [1, 1]} : vector<1x128xf32> to vector<1x32xf32>
    %85 = vector.extract_strided_slice %83 {offsets = [0, 32], sizes = [1, 32], strides = [1, 1]} : vector<1x128xf32> to vector<1x32xf32>
    %86 = vector.extract_strided_slice %83 {offsets = [0, 64], sizes = [1, 32], strides = [1, 1]} : vector<1x128xf32> to vector<1x32xf32>
    %cst_23 = arith.constant 2.000000e+00 : f32
    %87 = vector.broadcast %cst_23 : f32 to vector<1x32xf32>
    %88 = arith.mulf %87, %86 : vector<1x32xf32>
    %cst_24 = arith.constant 1.000000e+00 : f32
    %89 = vector.broadcast %cst_24 : f32 to vector<1x32xf32>
    %90 = arith.subf %88, %89 : vector<1x32xf32>
    %91 = vector.extract_strided_slice %83 {offsets = [0, 96], sizes = [1, 32], strides = [1, 1]} : vector<1x128xf32> to vector<1x32xf32>
    %92 = arith.mulf %85, %72 : vector<1x32xf32>
    %93 = arith.mulf %84, %90 : vector<1x32xf32>
    %94 = arith.addf %92, %93 : vector<1x32xf32>
    %95 = math.tanh %94 : vector<1x32xf32>
    %96 = arith.mulf %91, %95 : vector<1x32xf32>
    %97 = vector.extract_strided_slice %6 {offsets = [4, 0], sizes = [1, 128], strides = [1, 1]} : vector<8x128xf32> to vector<1x128xf32>
    %98 = arith.truncf %96 : vector<1x32xf32> to vector<1x32xbf16>
    %cst_25 = arith.constant dense<0.000000e+00> : vector<1x128xf32>
    %99 = tpu.matmul %98, %1, %cst_25 {dimension_numbers = #tpu.dot_dimension_numbers<[1], [0], [0], [1], [0, 0, 1, 1], [], []>} : vector<1x32xbf16>, vector<32x128xbf16>, vector<1x128xf32> -> vector<1x128xf32>
    %100 = arith.addf %97, %99 : vector<1x128xf32>
    %101 = arith.negf %100 : vector<1x128xf32>
    %102 = math.exp %101 : vector<1x128xf32>
    %cst_26 = arith.constant 1.000000e+00 : f32
    %103 = vector.broadcast %cst_26 : f32 to vector<1x128xf32>
    %104 = arith.addf %103, %102 : vector<1x128xf32>
    %105 = arith.divf %103, %104 : vector<1x128xf32>
    %106 = vector.extract_strided_slice %105 {offsets = [0, 0], sizes = [1, 32], strides = [1, 1]} : vector<1x128xf32> to vector<1x32xf32>
    %107 = vector.extract_strided_slice %105 {offsets = [0, 32], sizes = [1, 32], strides = [1, 1]} : vector<1x128xf32> to vector<1x32xf32>
    %108 = vector.extract_strided_slice %105 {offsets = [0, 64], sizes = [1, 32], strides = [1, 1]} : vector<1x128xf32> to vector<1x32xf32>
    %cst_27 = arith.constant 2.000000e+00 : f32
    %109 = vector.broadcast %cst_27 : f32 to vector<1x32xf32>
    %110 = arith.mulf %109, %108 : vector<1x32xf32>
    %cst_28 = arith.constant 1.000000e+00 : f32
    %111 = vector.broadcast %cst_28 : f32 to vector<1x32xf32>
    %112 = arith.subf %110, %111 : vector<1x32xf32>
    %113 = vector.extract_strided_slice %105 {offsets = [0, 96], sizes = [1, 32], strides = [1, 1]} : vector<1x128xf32> to vector<1x32xf32>
    %114 = arith.mulf %107, %94 : vector<1x32xf32>
    %115 = arith.mulf %106, %112 : vector<1x32xf32>
    %116 = arith.addf %114, %115 : vector<1x32xf32>
    %117 = math.tanh %116 : vector<1x32xf32>
    %118 = arith.mulf %113, %117 : vector<1x32xf32>
    %119 = vector.extract_strided_slice %6 {offsets = [5, 0], sizes = [1, 128], strides = [1, 1]} : vector<8x128xf32> to vector<1x128xf32>
    %120 = arith.truncf %118 : vector<1x32xf32> to vector<1x32xbf16>
    %cst_29 = arith.constant dense<0.000000e+00> : vector<1x128xf32>
    %121 = tpu.matmul %120, %1, %cst_29 {dimension_numbers = #tpu.dot_dimension_numbers<[1], [0], [0], [1], [0, 0, 1, 1], [], []>} : vector<1x32xbf16>, vector<32x128xbf16>, vector<1x128xf32> -> vector<1x128xf32>
    %122 = arith.addf %119, %121 : vector<1x128xf32>
    %123 = arith.negf %122 : vector<1x128xf32>
    %124 = math.exp %123 : vector<1x128xf32>
    %cst_30 = arith.constant 1.000000e+00 : f32
    %125 = vector.broadcast %cst_30 : f32 to vector<1x128xf32>
    %126 = arith.addf %125, %124 : vector<1x128xf32>
    %127 = arith.divf %125, %126 : vector<1x128xf32>
    %128 = vector.extract_strided_slice %127 {offsets = [0, 0], sizes = [1, 32], strides = [1, 1]} : vector<1x128xf32> to vector<1x32xf32>
    %129 = vector.extract_strided_slice %127 {offsets = [0, 32], sizes = [1, 32], strides = [1, 1]} : vector<1x128xf32> to vector<1x32xf32>
    %130 = vector.extract_strided_slice %127 {offsets = [0, 64], sizes = [1, 32], strides = [1, 1]} : vector<1x128xf32> to vector<1x32xf32>
    %cst_31 = arith.constant 2.000000e+00 : f32
    %131 = vector.broadcast %cst_31 : f32 to vector<1x32xf32>
    %132 = arith.mulf %131, %130 : vector<1x32xf32>
    %cst_32 = arith.constant 1.000000e+00 : f32
    %133 = vector.broadcast %cst_32 : f32 to vector<1x32xf32>
    %134 = arith.subf %132, %133 : vector<1x32xf32>
    %135 = vector.extract_strided_slice %127 {offsets = [0, 96], sizes = [1, 32], strides = [1, 1]} : vector<1x128xf32> to vector<1x32xf32>
    %136 = arith.mulf %129, %116 : vector<1x32xf32>
    %137 = arith.mulf %128, %134 : vector<1x32xf32>
    %138 = arith.addf %136, %137 : vector<1x32xf32>
    %139 = math.tanh %138 : vector<1x32xf32>
    %140 = arith.mulf %135, %139 : vector<1x32xf32>
    %141 = vector.extract_strided_slice %6 {offsets = [6, 0], sizes = [1, 128], strides = [1, 1]} : vector<8x128xf32> to vector<1x128xf32>
    %142 = arith.truncf %140 : vector<1x32xf32> to vector<1x32xbf16>
    %cst_33 = arith.constant dense<0.000000e+00> : vector<1x128xf32>
    %143 = tpu.matmul %142, %1, %cst_33 {dimension_numbers = #tpu.dot_dimension_numbers<[1], [0], [0], [1], [0, 0, 1, 1], [], []>} : vector<1x32xbf16>, vector<32x128xbf16>, vector<1x128xf32> -> vector<1x128xf32>
    %144 = arith.addf %141, %143 : vector<1x128xf32>
    %145 = arith.negf %144 : vector<1x128xf32>
    %146 = math.exp %145 : vector<1x128xf32>
    %cst_34 = arith.constant 1.000000e+00 : f32
    %147 = vector.broadcast %cst_34 : f32 to vector<1x128xf32>
    %148 = arith.addf %147, %146 : vector<1x128xf32>
    %149 = arith.divf %147, %148 : vector<1x128xf32>
    %150 = vector.extract_strided_slice %149 {offsets = [0, 0], sizes = [1, 32], strides = [1, 1]} : vector<1x128xf32> to vector<1x32xf32>
    %151 = vector.extract_strided_slice %149 {offsets = [0, 32], sizes = [1, 32], strides = [1, 1]} : vector<1x128xf32> to vector<1x32xf32>
    %152 = vector.extract_strided_slice %149 {offsets = [0, 64], sizes = [1, 32], strides = [1, 1]} : vector<1x128xf32> to vector<1x32xf32>
    %cst_35 = arith.constant 2.000000e+00 : f32
    %153 = vector.broadcast %cst_35 : f32 to vector<1x32xf32>
    %154 = arith.mulf %153, %152 : vector<1x32xf32>
    %cst_36 = arith.constant 1.000000e+00 : f32
    %155 = vector.broadcast %cst_36 : f32 to vector<1x32xf32>
    %156 = arith.subf %154, %155 : vector<1x32xf32>
    %157 = vector.extract_strided_slice %149 {offsets = [0, 96], sizes = [1, 32], strides = [1, 1]} : vector<1x128xf32> to vector<1x32xf32>
    %158 = arith.mulf %151, %138 : vector<1x32xf32>
    %159 = arith.mulf %150, %156 : vector<1x32xf32>
    %160 = arith.addf %158, %159 : vector<1x32xf32>
    %161 = math.tanh %160 : vector<1x32xf32>
    %162 = arith.mulf %157, %161 : vector<1x32xf32>
    %163 = vector.extract_strided_slice %6 {offsets = [7, 0], sizes = [1, 128], strides = [1, 1]} : vector<8x128xf32> to vector<1x128xf32>
    %164 = arith.truncf %162 : vector<1x32xf32> to vector<1x32xbf16>
    %cst_37 = arith.constant dense<0.000000e+00> : vector<1x128xf32>
    %165 = tpu.matmul %164, %1, %cst_37 {dimension_numbers = #tpu.dot_dimension_numbers<[1], [0], [0], [1], [0, 0, 1, 1], [], []>} : vector<1x32xbf16>, vector<32x128xbf16>, vector<1x128xf32> -> vector<1x128xf32>
    %166 = arith.addf %163, %165 : vector<1x128xf32>
    %167 = arith.negf %166 : vector<1x128xf32>
    %168 = math.exp %167 : vector<1x128xf32>
    %cst_38 = arith.constant 1.000000e+00 : f32
    %169 = vector.broadcast %cst_38 : f32 to vector<1x128xf32>
    %170 = arith.addf %169, %168 : vector<1x128xf32>
    %171 = arith.divf %169, %170 : vector<1x128xf32>
    %172 = vector.extract_strided_slice %171 {offsets = [0, 0], sizes = [1, 32], strides = [1, 1]} : vector<1x128xf32> to vector<1x32xf32>
    %173 = vector.extract_strided_slice %171 {offsets = [0, 32], sizes = [1, 32], strides = [1, 1]} : vector<1x128xf32> to vector<1x32xf32>
    %174 = vector.extract_strided_slice %171 {offsets = [0, 64], sizes = [1, 32], strides = [1, 1]} : vector<1x128xf32> to vector<1x32xf32>
    %cst_39 = arith.constant 2.000000e+00 : f32
    %175 = vector.broadcast %cst_39 : f32 to vector<1x32xf32>
    %176 = arith.mulf %175, %174 : vector<1x32xf32>
    %cst_40 = arith.constant 1.000000e+00 : f32
    %177 = vector.broadcast %cst_40 : f32 to vector<1x32xf32>
    %178 = arith.subf %176, %177 : vector<1x32xf32>
    %179 = vector.extract_strided_slice %171 {offsets = [0, 96], sizes = [1, 32], strides = [1, 1]} : vector<1x128xf32> to vector<1x32xf32>
    %180 = arith.mulf %173, %160 : vector<1x32xf32>
    %181 = arith.mulf %172, %178 : vector<1x32xf32>
    %182 = arith.addf %180, %181 : vector<1x32xf32>
    %183 = math.tanh %182 : vector<1x32xf32>
    %184 = arith.mulf %179, %183 : vector<1x32xf32>
    %185 = tpu.concatenate %30, %52, %74, %96, %118, %140, %162, %184 in 0 : vector<1x32xf32>, vector<1x32xf32>, vector<1x32xf32>, vector<1x32xf32>, vector<1x32xf32>, vector<1x32xf32>, vector<1x32xf32>, vector<1x32xf32> -> vector<8x32xf32>
    %c0_41 = arith.constant 0 : index
    %c0_42 = arith.constant 0 : index
    %186 = vector.load %arg4[%c0_41, %c0_42] : memref<8x32xf32, #tpu.memory_space<vmem>>, vector<8x32xf32>
    tpu.vector_store %arg4[%c0_41, %c0_42], %185 {strides = array<i32>} : memref<8x32xf32, #tpu.memory_space<vmem>>, vector<8x32xf32>,
    %187 = tpu.concatenate %184, %182 in 0 : vector<1x32xf32>, vector<1x32xf32> -> vector<2x32xf32>
    %c0_43 = arith.constant 0 : index
    %c0_44 = arith.constant 0 : index
    %188 = vector.load %arg5[%c0_43, %c0_44] : memref<2x32xf32, #tpu.memory_space<vmem>>, vector<2x32xf32>
    tpu.vector_store %arg5[%c0_43, %c0_44], %187 {strides = array<i32>} : memref<2x32xf32, #tpu.memory_space<vmem>>, vector<2x32xf32>,
    return
  }
}

</mosaic_0001>

<bundles_post_ra>
// kernel: lstm_categorical_forward.1
= control target key start
LH: loop header
LB: loop body
LE: loop exit
PB: predicated region body
PF: predicated region fallthrough
CT: control target
= control target key end

     0   :  { %11 = vsyncpa [#allocation3], 0  ;;  %s1277_s0 = inlined_call_operand.vmem [shape: bf16[8,16], index: 0, kind: input, shape index: {}]   ;;  %s1278_s1 = inlined_call_operand.hbm [shape: bf16[48,128], index: 1, kind: input, shape index: {}]   ;;  %s1279_s2 = inlined_call_operand.vmem [shape: f32[1,128], index: 2, kind: input, shape index: {}]   ;;  %s1280_s3 = inlined_call_operand.hbm [shape: f32[2,32], index: 3, kind: input, shape index: {}, may-alias: {3,5}]   ;;  %s1281_s4 = inlined_call_operand.hbm [shape: f32[8,32], index: 4, kind: output, shape index: {0}]   ;;  %s1282_s5 = inlined_call_operand.hbm [shape: f32[2,32], index: 5, kind: output, shape index: {1}, may-alias: {3,5}]  }
   0x1   :  { %12 = vsyncpa [#allocation6], 0 }
   0x2   :  { %13 = vsyncpa [#allocation4], 0 }
   0x3   :  { %14 = vsyncpa [#allocation9], 0  ;;  %s1102_s18 = smov [#allocation2]  }
   0x4   :  { %s22_s19 = sshll.u32 %s1102_s18, 4  ;;  %s23_s19 = int_to_ptr.vmem [resolvable:$true] %s22_s19 }
   0x5   :  { %s1022_s20 = scalar_lea.vmem %s23_s19, 384  ;;  %p1027_p1 = scmp.lt.s32.totalorder %s23_s19, %s23_s19 }
   0x6   :  { %p1023_p0 = scmp.ne.s32.totalorder %s23_s19, %s1022_s20  ;;  %p1028_p2 = scmp.lt.s32.totalorder %s1022_s20, %s1022_s20 }
   0x8   :  { %p1029_p3 = por %p1028_p2, %p1027_p1 }
   0xa   :  { %p1030_p4 = pnand %p1029_p3, %p1023_p0 }
   0xc   :  { %1033 = shalt.err (!%p1030_p4)
}
   0xd   :  { %s1103_s21 = smov 64   ;;  %s1104_s22 = smov 4  }
   0xe   :  { %28 = dma.hbm_to_vmem [thread:$0]  %s1278_s1, 384, %s23_s19, [#allocation3], %s1103_s21, %s1103_s21, %s1104_s22  }
   0xf   :  { %s1105_s25 = smov [#allocation5]  }
  0x10   :  { %s37_s26 = sshll.u32 %s1105_s25, 4  ;;  %s38_s26 = int_to_ptr.vmem [resolvable:$true] %s37_s26 }
  0x11   :  { %s1042_s27 = scalar_lea.vmem %s38_s26, 32  ;;  %p1047_p6 = scmp.lt.s32.totalorder %s38_s26, %s38_s26 }
  0x12   :  { %p1043_p5 = scmp.ne.s32.totalorder %s38_s26, %s1042_s27  ;;  %p1048_p7 = scmp.lt.s32.totalorder %s1042_s27, %s1042_s27 }
  0x14   :  { %p1049_p8 = por %p1048_p7, %p1047_p6 }
  0x16   :  { %p1050_p9 = pnand %p1049_p8, %p1043_p5 }
  0x18   :  { %1053 = shalt.err (!%p1050_p9)
}
  0x19   :  { %40 = dma.hbm_to_vmem [thread:$0]  %s1280_s3, 32, %s38_s26, [#allocation6]  }
  0x1a   :  { %1094 = dma.done.wait [#allocation3], 384  }
  0x1b   :  { %1095 = vsyncadd [#allocation3], 4294966912 }
  0x1c   :  { %1096 = dma.done.wait [#allocation6], 32  }
  0x1d   :  { %1097 = vsyncadd [#allocation6], 4294967264  ;;  %v1106_v0 = vmov 0.0   ;;  %vm1107_vm0 = vmmov 0   ;;  %v963_v1 = vld [vmem:[#allocation2] sm:$0xff]   ;;  %v1155_v2 = vld [vmem:[#allocation2 + $0x10] sm:$0xff]  }
  0x1e   :  { %884 = vmatprep.subr.bf16.mxu0 %v1106_v0  ;;  %890 = vmatprep.subr.bf16.mxu1 %v1106_v0  ;;  %vm68_vm1 = vcmask 130048   ;;  %v54_v3 = vld [vmem:[%s1277_s0] sm:$0xf]  ;;  %v1161_v4 = vld [vmem:[#allocation2 + $0x8] sm:$0xff]   ;;  %v112_v5 = vld [vmem:[#allocation5] sm:$0x1] }
  0x1f   :  { %886 = vmatprep.mubr.msk.bf16.mxu0 %vm1107_vm0, %v1106_v0  ;;  %894 = vmatprep.mubr.msk.bf16.mxu1 %vm1107_vm0, %v1106_v0  ;;  %v114_v6 = vpack.c.bf16 %v112_v5, %v112_v5  ;;  %vm127_vm2 = vcmask 261120   ;;  %v829_v7 = vld [vmem:[%s1279_s2] ss:$0 sm:$0xff]  ;;  %v113_v24 = vld [vmem:[#allocation5 + $0x1] sm:$0x1]  ;;  %s1108_s2 = smov 32  }
  0x20   :  { %885 = vmatpush3.bf16.msra.mxu0 %v963_v1  ;;  %891 = vmatpush3.bf16.msra.mxu1 %v1155_v2  ;;  %vm765_vm3 = vcmask 1040384   ;;  %vm767_vm4 = vcmask 1041408   ;;  %vm769_vm5 = vcmask 1042432   ;;  %vm771_vm6 = vcmask 1043456   ;;  %s1109_s6 = smov [#allocation7]   ;;  %s1110_s8 = smov [#allocation8]  }
  0x21   :  { %898 = vmatprep.subr.bf16.mxu0 %v1106_v0  ;;  %892 = vmatprep.subr.bf16.mxu1 %v1106_v0  ;;  %vm773_vm7 = vcmask 1044480   ;;  %vm775_vm8 = vcmask 1045504   ;;  %vm777_vm9 = vcmask 1046528   ;;  %s805_s7 = sshll.u32 %s1109_s6, 4  ;;  %s815_s9 = sshll.u32 %s1110_s8, 4  ;;  %vm797_vm10 = vcmask 254976   ;;  %s806_s7 = int_to_ptr.vmem [resolvable:$true] %s805_s7  ;;  %s816_s9 = int_to_ptr.vmem [resolvable:$true] %s815_s9 }
  0x22   :  { %s1054_s10 = scalar_lea.vmem %s806_s7, 128  ;;  %p1059_p11 = scmp.lt.s32.totalorder %s806_s7, %s806_s7 }
  0x23   :  { %887 = vmatmul.mubr.msk.bf16.vlgmr.msra.gmra.mxu0 %vm68_vm1, %v54_v3  ;;  %p1055_p10 = scmp.ne.s32.totalorder %s806_s7, %s1054_s10  ;;  %p1060_p12 = scmp.lt.s32.totalorder %s1054_s10, %s1054_s10 }
  0x24   :  { %899 = vmatpush3.bf16.msra.mxu0 %v1155_v2  ;;  %902 = vmatprep.mubr.msk.bf16.mxu0 %vm1107_vm0, %v1106_v0 }
  0x25   :  { %893 = vmatpush3.bf16.msra.mxu1 %v1161_v4  ;;  %900 = vmatprep.subr.bf16.mxu0 %v1106_v0  ;;  %p1061_p13 = por %p1060_p12, %p1059_p11 }
  0x26   :  { %906 = vmatprep.subr.bf16.mxu1 %v1106_v0 }
  0x27   :  { %p1062_p0 = pnand %p1061_p13, %p1055_p10 }
  0x28   :  { %895 = vmatmul.mubr.msk.bf16.vlgmr.msra.gmra.mxu1 %vm127_vm2, %v114_v6  ;;  %901 = vmatpush3.bf16.msra.mxu0 %v1161_v4 }
  0x29   :  { %907 = vmatpush3.bf16.msra.mxu1 %v1155_v2  ;;  %910 = vmatprep.mubr.msk.bf16.mxu1 %vm1107_vm0, %v1106_v0 }
  0x2a   :  { %908 = vmatprep.subr.bf16.mxu1 %v1106_v0  ;;  %914 = vmatprep.subr.bf16.mxu0 %v1106_v0 }
  0x2d   :  { %909 = vmatpush3.bf16.msra.mxu1 %v1161_v4 }
  0x2e   :  { %922 = vmatprep.subr.bf16.mxu1 %v1106_v0 }
  0xe3   :  { %v106_v8 = vpop.f32.mrf.mxu0 }
  0xe4   :  { %v1183_v9 = vadd.f32 %v829_v7, %v106_v8 }
  0xe5   :  { %v888_v10 = vpop.f32.mrf.mxu0 }
  0xe7   :  { %v109_v11 = vpop.f32.mrf.mxu0 }
  0xe8   :  { %v165_v12 = vpop.f32.mrf.mxu1 }
  0xe9   :  { %v171_v13 = vadd.f32 %v165_v12, %v1183_v9  ;;  %v889_v14 = vpop.f32.mrf.mxu0 }
  0xea   :  { %v896_v15 = vpop.f32.mrf.mxu1 }
  0xeb   :  { %v835_v16 = vmul.f32 -1.442695, %v171_v13 }
  0xec   :  { %v168_v17 = vpop.f32.mrf.mxu1 }
  0xed   :  { %966 = vpow2.f32 %v835_v16 }
  0xee   :  { %v897_v18 = vpop.f32.mrf.mxu1 }
  0xfa   :  { %v967_v19 = vpop.eup %966 }
  0xfb   :  { %v175_v20 = vadd.f32 1.0, %v967_v19 }
  0xfd   :  { %968 = vrcp.f32 %v175_v20 }
 0x10a   :  { %v969_v21 = vpop.eup %968 }
 0x10b   :  { %v178_v22 = vmul.f32 2.0, %v969_v21 }
 0x10d   :  { %v836_v23 = vadd.f32 -1.0, %v178_v22 }
 0x10f   :  { %186 = vrot.lane.b32.xlu0 %v836_v23, %s1103_s21 }
 0x113   :  { %181 = vrot.lane.b32.xlu0 %v113_v24, %s1108_s2 }
 0x181   :  { %v187_v25 = vpop.permute.xlu0 %186 }
 0x182   :  { %v189_v26 = vmul.f32 %v969_v21, %v187_v25 }
 0x184   :  { %191 = vrot.lane.b32.xlu1 %v189_v26, %s1108_s2 }
 0x185   :  { %v182_v27 = vpop.permute.xlu0 %181 }
 0x186   :  { %v184_v28 = vmul.f32 %v969_v21, %v182_v27 }
 0x1f6   :  { %v192_v29 = vpop.permute.xlu1 %191 }
 0x1f7   :  { %v194_v30 = vadd.f32 %v192_v29, %v184_v28 }
 0x1f9   :  { %970 = vtanh.f32 %v194_v30  ;;  %v261_v50 = vrot.slane %v194_v30, 7 }
 0x206   :  { %v971_v31 = vpop.eup %970 }
 0x207   :  { %197 = vrot.lane.b32.xlu1 %v971_v31, %s1103_s21 }
 0x279   :  { %v198_v32 = vpop.permute.xlu1 %197 }
 0x27a   :  { %v1190_v33 = vmul.f32 %v969_v21, %v198_v32 }
 0x27c   :  { %v201_v34 = vpack.c.bf16 %v1190_v33, %v1190_v33 }
 0x27e   :  { %203 = vrot.lane.b32.xlu0 %v201_v34, %s1108_s2 }
 0x2f0   :  { %v204_v35 = vpop.permute.xlu0 %203 }
 0x2f1   :  { %903 = vmatmul.mubr.msk.bf16.vlgmr.msra.gmra.mxu0 %vm127_vm2, %v204_v35 }
 0x2f2   :  { %915 = vmatpush3.bf16.msra.mxu0 %v1155_v2  ;;  %918 = vmatprep.mubr.msk.bf16.mxu0 %vm1107_vm0, %v1106_v0 }
 0x2f3   :  { %916 = vmatprep.subr.bf16.mxu0 %v1106_v0 }
 0x2f6   :  { %917 = vmatpush3.bf16.msra.mxu0 %v1161_v4 }
 0x2f7   :  { %930 = vmatprep.subr.bf16.mxu0 %v1106_v0 }
 0x3b1   :  { %v242_v36 = vpop.f32.mrf.mxu0 }
 0x3b2   :  { %v249_v37 = vrot.slane %v242_v36, 7 }
 0x3b3   :  { %v904_v38 = vpop.f32.mrf.mxu0 }
 0x3b4   :  { %v251_v39 = vadd.f32 %v249_v37, %v1183_v9 }
 0x3b5   :  { %v245_v40 = vpop.f32.mrf.mxu0 }
 0x3b6   :  { %v838_v41 = vmul.f32 -1.442695, %v251_v39 }
 0x3b7   :  { %v905_v42 = vpop.f32.mrf.mxu0 }
 0x3b8   :  { %972 = vpow2.f32 %v838_v41 }
 0x3c5   :  { %v973_v43 = vpop.eup %972 }
 0x3c6   :  { %v255_v44 = vadd.f32 1.0, %v973_v43 }
 0x3c8   :  { %974 = vrcp.f32 %v255_v44 }
 0x3d5   :  { %v975_v45 = vpop.eup %974 }
 0x3d6   :  { %v258_v46 = vmul.f32 2.0, %v975_v45  ;;  %v263_v51 = vmul.f32 %v975_v45, %v261_v50 }
 0x3d8   :  { %v839_v47 = vadd.f32 -1.0, %v258_v46 }
 0x3da   :  { %265 = vrot.lane.b32.xlu1 %v839_v47, %s1103_s21 }
 0x44c   :  { %v266_v48 = vpop.permute.xlu1 %265 }
 0x44d   :  { %v268_v49 = vmul.f32 %v975_v45, %v266_v48 }
 0x44f   :  { %270 = vrot.lane.b32.xlu0 %v268_v49, %s1108_s2 }
 0x4c1   :  { %v271_v52 = vpop.permute.xlu0 %270 }
 0x4c2   :  { %v273_v53 = vadd.f32 %v271_v52, %v263_v51 }
 0x4c4   :  { %976 = vtanh.f32 %v273_v53  ;;  %v342_v14 = vrot.slane %v273_v53, 7 }
 0x4d1   :  { %v977_v54 = vpop.eup %976 }
 0x4d2   :  { %276 = vrot.lane.b32.xlu1 %v977_v54, %s1103_s21 }
 0x544   :  { %v277_v55 = vpop.permute.xlu1 %276 }
 0x545   :  { %v279_v56 = vmul.f32 %v975_v45, %v277_v55 }
 0x547   :  { %v280_v57 = vpack.c.bf16 %v279_v56, %v279_v56  ;;  %v766_v21 = vsel %vm765_vm3, %v1190_v33, %v279_v56 }
 0x549   :  { %v282_v58 = vshrl.u32 %v280_v57, 16 }
 0x54b   :  { %284 = vrot.lane.b32.xlu0 %v282_v58, %s1108_s2 }
 0x5bd   :  { %v285_v59 = vpop.permute.xlu0 %284 }
 0x5be   :  { %911 = vmatmul.mubr.msk.bf16.vlgmr.msra.gmra.mxu1 %vm127_vm2, %v285_v59 }
 0x5bf   :  { %923 = vmatpush3.bf16.msra.mxu1 %v1155_v2  ;;  %926 = vmatprep.mubr.msk.bf16.mxu1 %vm1107_vm0, %v1106_v0 }
 0x5c0   :  { %924 = vmatprep.subr.bf16.mxu1 %v1106_v0 }
 0x5c3   :  { %925 = vmatpush3.bf16.msra.mxu1 %v1161_v4 }
 0x5c4   :  { %938 = vmatprep.subr.bf16.mxu1 %v1106_v0 }
 0x67e   :  { %v323_v60 = vpop.f32.mrf.mxu1 }
 0x67f   :  { %v330_v61 = vrot.slane %v323_v60, 6 }
 0x680   :  { %v912_v62 = vpop.f32.mrf.mxu1 }
 0x681   :  { %v332_v63 = vadd.f32 %v330_v61, %v1183_v9 }
 0x682   :  { %v326_v1 = vpop.f32.mrf.mxu1 }
 0x683   :  { %v841_v3 = vmul.f32 -1.442695, %v332_v63 }
 0x684   :  { %v913_v5 = vpop.f32.mrf.mxu1 }
 0x685   :  { %978 = vpow2.f32 %v841_v3 }
 0x692   :  { %v979_v6 = vpop.eup %978 }
 0x693   :  { %v336_v7 = vadd.f32 1.0, %v979_v6 }
 0x695   :  { %980 = vrcp.f32 %v336_v7 }
 0x6a2   :  { %v981_v8 = vpop.eup %980 }
 0x6a3   :  { %v339_v10 = vmul.f32 2.0, %v981_v8  ;;  %v344_v15 = vmul.f32 %v981_v8, %v342_v14 }
 0x6a5   :  { %v842_v11 = vadd.f32 -1.0, %v339_v10 }
 0x6a7   :  { %346 = vrot.lane.b32.xlu1 %v842_v11, %s1103_s21 }
 0x719   :  { %v347_v12 = vpop.permute.xlu1 %346 }
 0x71a   :  { %v349_v13 = vmul.f32 %v981_v8, %v347_v12 }
 0x71c   :  { %351 = vrot.lane.b32.xlu0 %v349_v13, %s1108_s2 }
 0x78e   :  { %v352_v16 = vpop.permute.xlu0 %351 }
 0x78f   :  { %v354_v17 = vadd.f32 %v352_v16, %v344_v15 }
 0x791   :  { %982 = vtanh.f32 %v354_v17  ;;  %v422_v40 = vrot.slane %v354_v17, 7 }
 0x79e   :  { %v983_v18 = vpop.eup %982 }
 0x79f   :  { %357 = vrot.lane.b32.xlu1 %v983_v18, %s1103_s21 }
 0x811   :  { %v358_v19 = vpop.permute.xlu1 %357 }
 0x812   :  { %v360_v20 = vmul.f32 %v981_v8, %v358_v19 }
 0x814   :  { %v361_v22 = vpack.c.bf16 %v360_v20, %v360_v20  ;;  %v768_v23 = vsel %vm767_vm4, %v766_v21, %v360_v20 }
 0x816   :  { %v363_v24 = vrot.slane %v361_v22, 1 }
 0x818   :  { %364 = vrot.lane.b32.xlu0 %v363_v24, %s1108_s2 }
 0x88a   :  { %v365_v25 = vpop.permute.xlu0 %364 }
 0x88b   :  { %919 = vmatmul.mubr.msk.bf16.vlgmr.msra.gmra.mxu0 %vm127_vm2, %v365_v25 }
 0x88c   :  { %931 = vmatpush3.bf16.msra.mxu0 %v1155_v2  ;;  %934 = vmatprep.mubr.msk.bf16.mxu0 %vm1107_vm0, %v1106_v0 }
 0x88d   :  { %932 = vmatprep.subr.bf16.mxu0 %v1106_v0 }
 0x890   :  { %933 = vmatpush3.bf16.msra.mxu0 %v1161_v4 }
 0x891   :  { %946 = vmatprep.subr.bf16.mxu0 %v1106_v0 }
 0x94b   :  { %v403_v26 = vpop.f32.mrf.mxu0 }
 0x94c   :  { %v410_v27 = vrot.slane %v403_v26, 5 }
 0x94d   :  { %v920_v28 = vpop.f32.mrf.mxu0 }
 0x94e   :  { %v412_v29 = vadd.f32 %v410_v27, %v1183_v9 }
 0x94f   :  { %v406_v30 = vpop.f32.mrf.mxu0 }
 0x950   :  { %v844_v31 = vmul.f32 -1.442695, %v412_v29 }
 0x951   :  { %v921_v32 = vpop.f32.mrf.mxu0 }
 0x952   :  { %984 = vpow2.f32 %v844_v31 }
 0x95f   :  { %v985_v33 = vpop.eup %984 }
 0x960   :  { %v416_v34 = vadd.f32 1.0, %v985_v33 }
 0x962   :  { %986 = vrcp.f32 %v416_v34 }
 0x96f   :  { %v987_v35 = vpop.eup %986 }
 0x970   :  { %v419_v36 = vmul.f32 2.0, %v987_v35  ;;  %v424_v41 = vmul.f32 %v987_v35, %v422_v40 }
 0x972   :  { %v845_v37 = vadd.f32 -1.0, %v419_v36 }
 0x974   :  { %426 = vrot.lane.b32.xlu1 %v845_v37, %s1103_s21 }
 0x9e6   :  { %v427_v38 = vpop.permute.xlu1 %426 }
 0x9e7   :  { %v429_v39 = vmul.f32 %v987_v35, %v427_v38 }
 0x9e9   :  { %431 = vrot.lane.b32.xlu0 %v429_v39, %s1108_s2 }
 0xa5b   :  { %v432_v42 = vpop.permute.xlu0 %431 }
 0xa5c   :  { %v434_v43 = vadd.f32 %v432_v42, %v424_v41 }
 0xa5e   :  { %988 = vtanh.f32 %v434_v43  ;;  %v504_v5 = vrot.slane %v434_v43, 7 }
 0xa6b   :  { %v989_v44 = vpop.eup %988 }
 0xa6c   :  { %437 = vrot.lane.b32.xlu1 %v989_v44, %s1103_s21 }
 0xade   :  { %v438_v45 = vpop.permute.xlu1 %437 }
 0xadf   :  { %v440_v46 = vmul.f32 %v987_v35, %v438_v45 }
 0xae1   :  { %v441_v47 = vpack.c.bf16 %v440_v46, %v440_v46  ;;  %v770_v48 = vsel %vm769_vm5, %v768_v23, %v440_v46 }
 0xae3   :  { %v443_v49 = vshrl.u32 %v441_v47, 16 }
 0xae5   :  { %v445_v50 = vrot.slane %v443_v49, 1 }
 0xae7   :  { %446 = vrot.lane.b32.xlu0 %v445_v50, %s1108_s2 }
 0xb59   :  { %v447_v51 = vpop.permute.xlu0 %446 }
 0xb5a   :  { %927 = vmatmul.mubr.msk.bf16.vlgmr.msra.gmra.mxu1 %vm127_vm2, %v447_v51 }
 0xb5b   :  { %939 = vmatpush3.bf16.msra.mxu1 %v1155_v2  ;;  %942 = vmatprep.mubr.msk.bf16.mxu1 %vm1107_vm0, %v1106_v0 }
 0xb5c   :  { %940 = vmatprep.subr.bf16.mxu1 %v1106_v0 }
 0xb5f   :  { %941 = vmatpush3.bf16.msra.mxu1 %v1161_v4 }
 0xc1a   :  { %v485_v52 = vpop.f32.mrf.mxu1 }
 0xc1b   :  { %v492_v53 = vrot.slane %v485_v52, 4 }
 0xc1c   :  { %v928_v54 = vpop.f32.mrf.mxu1 }
 0xc1d   :  { %v494_v55 = vadd.f32 %v492_v53, %v1183_v9 }
 0xc1e   :  { %v488_v56 = vpop.f32.mrf.mxu1 }
 0xc1f   :  { %v847_v57 = vmul.f32 -1.442695, %v494_v55 }
 0xc20   :  { %v929_v58 = vpop.f32.mrf.mxu1 }
 0xc21   :  { %990 = vpow2.f32 %v847_v57 }
 0xc2e   :  { %v991_v59 = vpop.eup %990 }
 0xc2f   :  { %v498_v60 = vadd.f32 1.0, %v991_v59 }
 0xc31   :  { %992 = vrcp.f32 %v498_v60 }
 0xc3e   :  { %v993_v61 = vpop.eup %992 }
 0xc3f   :  { %v501_v62 = vmul.f32 2.0, %v993_v61  ;;  %v506_v6 = vmul.f32 %v993_v61, %v504_v5 }
 0xc41   :  { %v848_v63 = vadd.f32 -1.0, %v501_v62 }
 0xc43   :  { %508 = vrot.lane.b32.xlu1 %v848_v63, %s1103_s21 }
 0xcb5   :  { %v509_v1 = vpop.permute.xlu1 %508 }
 0xcb6   :  { %v511_v3 = vmul.f32 %v993_v61, %v509_v1 }
 0xcb8   :  { %513 = vrot.lane.b32.xlu0 %v511_v3, %s1108_s2 }
 0xd2a   :  { %v514_v7 = vpop.permute.xlu0 %513 }
 0xd2b   :  { %v516_v8 = vadd.f32 %v514_v7, %v506_v6 }
 0xd2d   :  { %994 = vtanh.f32 %v516_v8 }
 0xd3a   :  { %v995_v10 = vpop.eup %994 }
 0xd3b   :  { %519 = vrot.lane.b32.xlu1 %v995_v10, %s1103_s21 }
 0xdad   :  { %v520_v11 = vpop.permute.xlu1 %519 }
 0xdae   :  { %v522_v12 = vmul.f32 %v993_v61, %v520_v11 }
 0xdb0   :  { %v523_v13 = vpack.c.bf16 %v522_v12, %v522_v12  ;;  %v772_v14 = vsel %vm771_vm6, %v770_v48, %v522_v12 }
 0xdb2   :  { %v525_v15 = vrot.slane %v523_v13, 2 }
 0xdb4   :  { %526 = vrot.lane.b32.xlu0 %v525_v15, %s1108_s2 }
 0xe26   :  { %v527_v16 = vpop.permute.xlu0 %526 }
 0xe27   :  { %935 = vmatmul.mubr.msk.bf16.vlgmr.msra.gmra.mxu0 %vm127_vm2, %v527_v16 }
 0xe28   :  { %947 = vmatpush3.bf16.msra.mxu0 %v1155_v2  ;;  %950 = vmatprep.mubr.msk.bf16.mxu0 %vm1107_vm0, %v1106_v0 }
 0xe29   :  { %948 = vmatprep.subr.bf16.mxu0 %v1106_v0 }
 0xe2c   :  { %949 = vmatpush3.bf16.msra.mxu0 %v1161_v4  ;;  %v584_v4 = vrot.slane %v516_v8, 7 }
 0xee7   :  { %v565_v17 = vpop.f32.mrf.mxu0 }
 0xee8   :  { %v572_v18 = vrot.slane %v565_v17, 3 }
 0xee9   :  { %v936_v19 = vpop.f32.mrf.mxu0 }
 0xeea   :  { %v574_v20 = vadd.f32 %v572_v18, %v1183_v9 }
 0xeeb   :  { %v568_v21 = vpop.f32.mrf.mxu0 }
 0xeec   :  { %v850_v22 = vmul.f32 -1.442695, %v574_v20 }
 0xeed   :  { %v937_v23 = vpop.f32.mrf.mxu0 }
 0xeee   :  { %996 = vpow2.f32 %v850_v22 }
 0xefb   :  { %v997_v24 = vpop.eup %996 }
 0xefc   :  { %v578_v25 = vadd.f32 1.0, %v997_v24 }
 0xefe   :  { %998 = vrcp.f32 %v578_v25 }
 0xf0b   :  { %v999_v2 = vpop.eup %998 }
 0xf0c   :  { %v581_v26 = vmul.f32 2.0, %v999_v2  ;;  %v586_v29 = vmul.f32 %v999_v2, %v584_v4 }
 0xf0e   :  { %v851_v27 = vadd.f32 -1.0, %v581_v26 }
 0xf10   :  { %588 = vrot.lane.b32.xlu1 %v851_v27, %s1103_s21 }
 0xf82   :  { %v589_v0 = vpop.permute.xlu1 %588 }
 0xf83   :  { %v591_v28 = vmul.f32 %v999_v2, %v589_v0 }
 0xf85   :  { %593 = vrot.lane.b32.xlu0 %v591_v28, %s1108_s2 }
 0xff7   :  { %v594_v30 = vpop.permute.xlu0 %593 }
 0xff8   :  { %v596_v31 = vadd.f32 %v594_v30, %v586_v29 }
 0xffa   :  { %1000 = vtanh.f32 %v596_v31  ;;  %v666_v54 = vrot.slane %v596_v31, 7 }
0x1007   :  { %v1001_v32 = vpop.eup %1000 }
0x1008   :  { %599 = vrot.lane.b32.xlu1 %v1001_v32, %s1103_s21 }
0x107a   :  { %v600_v33 = vpop.permute.xlu1 %599 }
0x107b   :  { %v602_v34 = vmul.f32 %v999_v2, %v600_v33 }
0x107d   :  { %v603_v35 = vpack.c.bf16 %v602_v34, %v602_v34  ;;  %v774_v36 = vsel %vm773_vm7, %v772_v14, %v602_v34 }
0x107f   :  { %v605_v37 = vshrl.u32 %v603_v35, 16 }
0x1081   :  { %v607_v38 = vrot.slane %v605_v37, 2 }
0x1083   :  { %608 = vrot.lane.b32.xlu0 %v607_v38, %s1108_s2 }
0x10f5   :  { %v609_v39 = vpop.permute.xlu0 %608 }
0x10f6   :  { %943 = vmatmul.mubr.msk.bf16.vlgmr.msra.gmra.mxu1 %vm127_vm2, %v609_v39 }
0x11b6   :  { %v647_v40 = vpop.f32.mrf.mxu1 }
0x11b7   :  { %v654_v41 = vrot.slane %v647_v40, 2 }
0x11b8   :  { %v944_v42 = vpop.f32.mrf.mxu1 }
0x11b9   :  { %v656_v43 = vadd.f32 %v654_v41, %v1183_v9 }
0x11ba   :  { %v650_v44 = vpop.f32.mrf.mxu1 }
0x11bb   :  { %v853_v45 = vmul.f32 -1.442695, %v656_v43 }
0x11bc   :  { %v945_v46 = vpop.f32.mrf.mxu1 }
0x11bd   :  { %1002 = vpow2.f32 %v853_v45 }
0x11ca   :  { %v1003_v47 = vpop.eup %1002 }
0x11cb   :  { %v660_v48 = vadd.f32 1.0, %v1003_v47 }
0x11cd   :  { %1004 = vrcp.f32 %v660_v48 }
0x11da   :  { %v1005_v49 = vpop.eup %1004 }
0x11db   :  { %v663_v50 = vmul.f32 2.0, %v1005_v49  ;;  %v668_v55 = vmul.f32 %v1005_v49, %v666_v54 }
0x11dd   :  { %v854_v51 = vadd.f32 -1.0, %v663_v50 }
0x11df   :  { %670 = vrot.lane.b32.xlu1 %v854_v51, %s1103_s21 }
0x1251   :  { %v671_v52 = vpop.permute.xlu1 %670 }
0x1252   :  { %v673_v53 = vmul.f32 %v1005_v49, %v671_v52 }
0x1254   :  { %675 = vrot.lane.b32.xlu0 %v673_v53, %s1108_s2 }
0x12c6   :  { %v676_v56 = vpop.permute.xlu0 %675 }
0x12c7   :  { %v678_v57 = vadd.f32 %v676_v56, %v668_v55 }
0x12c9   :  { %1006 = vtanh.f32 %v678_v57  ;;  %v746_v19 = vrot.slane %v678_v57, 7 }
0x12d6   :  { %v1007_v58 = vpop.eup %1006 }
0x12d7   :  { %681 = vrot.lane.b32.xlu1 %v1007_v58, %s1103_s21 }
0x1349   :  { %v682_v59 = vpop.permute.xlu1 %681 }
0x134a   :  { %v684_v60 = vmul.f32 %v1005_v49, %v682_v59 }
0x134c   :  { %v685_v61 = vpack.c.bf16 %v684_v60, %v684_v60  ;;  %v776_v62 = vsel %vm775_vm8, %v774_v36, %v684_v60 }
0x134e   :  { %v687_v63 = vrot.slane %v685_v61, 3 }
0x1350   :  { %688 = vrot.lane.b32.xlu0 %v687_v63, %s1108_s2 }
0x13c2   :  { %v689_v1 = vpop.permute.xlu0 %688 }
0x13c3   :  { %951 = vmatmul.mubr.msk.bf16.vlgmr.msra.gmra.mxu0 %vm127_vm2, %v689_v1 }
0x1483   :  { %v727_v3 = vpop.f32.mrf.mxu0 }
0x1484   :  { %v734_v5 = vrot.slane %v727_v3, 1 }
0x1485   :  { %v952_v6 = vpop.f32.mrf.mxu0 }
0x1486   :  { %v736_v7 = vadd.f32 %v734_v5, %v1183_v9 }
0x1487   :  { %v730_v8 = vpop.f32.mrf.mxu0 }
0x1488   :  { %v856_v10 = vmul.f32 -1.442695, %v736_v7 }
0x1489   :  { %v953_v11 = vpop.f32.mrf.mxu0 }
0x148a   :  { %1008 = vpow2.f32 %v856_v10 }
0x1497   :  { %v1009_v12 = vpop.eup %1008 }
0x1498   :  { %v740_v13 = vadd.f32 1.0, %v1009_v12 }
0x149a   :  { %1010 = vrcp.f32 %v740_v13 }
0x14a7   :  { %v1011_v14 = vpop.eup %1010 }
0x14a8   :  { %v743_v15 = vmul.f32 2.0, %v1011_v14  ;;  %v748_v20 = vmul.f32 %v1011_v14, %v746_v19 }
0x14aa   :  { %v857_v16 = vadd.f32 -1.0, %v743_v15 }
0x14ac   :  { %750 = vrot.lane.b32.xlu1 %v857_v16, %s1103_s21 }
0x151e   :  { %v751_v17 = vpop.permute.xlu1 %750 }
0x151f   :  { %v753_v18 = vmul.f32 %v1011_v14, %v751_v17 }
0x1521   :  { %755 = vrot.lane.b32.xlu0 %v753_v18, %s1108_s2 }
0x1593   :  { %v756_v21 = vpop.permute.xlu0 %755 }
0x1594   :  { %v758_v9 = vadd.f32 %v756_v21, %v748_v20 }
0x1596   :  { %1012 = vtanh.f32 %v758_v9  ;;  %v788_v22 = vrot.slane %v758_v9, 6 }
0x1598   :  { %789 = vrot.lane.b32.xlu0 %v788_v22, %s1103_s21 }
0x15a3   :  { %v1013_v23 = vpop.eup %1012 }
0x15a4   :  { %761 = vrot.lane.b32.xlu1 %v1013_v23, %s1103_s21 }
0x160a   :  { %v790_v27 = vpop.permute.xlu0 %789 }
0x1616   :  { %v762_v24 = vpop.permute.xlu1 %761 }
0x1617   :  { %v764_v25 = vmul.f32 %v1011_v14, %v762_v24 }
0x1619   :  { %v785_v2 = vrot.slane %v764_v25, 7  ;;  %v778_v26 = vsel %vm777_vm9, %v776_v62, %v764_v25 }
0x161a   :  { %780 = vrot.lane.b32.xlu1 %v778_v26, %s1108_s2 }
0x161b   :  { %v792_v0 = vsel %vm765_vm3, %v785_v2, %v790_v27 }
0x161c   :  { %794 = vrot.lane.b32.xlu0 %v792_v0, %s1108_s2 }
0x168c   :  { %v781_v28 = vpop.permute.xlu1 %780 }
0x168d   :  { %783 = vst.msk [vmem:[#allocation7] sm:$0xff] %vm127_vm2, %v781_v28 }
0x168e   :  { %v795_v4 = vpop.permute.xlu0 %794 }
0x168f   :  { %1065 = shalt.err (!%p1062_p0)
}
0x1690   :  { %808 = dma.vmem_to_hbm [thread:$0]  %s806_s7, 128, %s1281_s4, [#allocation4]   ;;  %798 = vst.msk [vmem:[#allocation8] sm:$0x3] %vm797_vm10, %v795_v4 }
0x1691   :  { %s1074_s13 = scalar_lea.vmem %s816_s9, 32  ;;  %p1079_p2 = scmp.lt.s32.totalorder %s816_s9, %s816_s9 }
0x1692   :  { %p1075_p1 = scmp.ne.s32.totalorder %s816_s9, %s1074_s13  ;;  %p1080_p3 = scmp.lt.s32.totalorder %s1074_s13, %s1074_s13 }
0x1694   :  { %p1081_p4 = por %p1080_p3, %p1079_p2 }
0x1696   :  { %p1082_p5 = pnand %p1081_p4, %p1075_p1 }
0x1698   :  { %1085 = shalt.err (!%p1082_p5)
}
0x1699   :  { %818 = dma.vmem_to_hbm [thread:$0]  %s816_s9, 32, %s1282_s5, [#allocation9]  }
0x169a   :  { %1098 = dma.done.wait [#allocation4], 128  }
0x169b   :  { %1099 = vsyncadd [#allocation4], 4294967168 }
0x169c   :  { %1100 = dma.done.wait [#allocation9], 32  }
0x169d   :  { %1101 = vsyncadd [#allocation9], 4294967264 }
0x169e   :  { %825 = vsyncpa [#allocation3], 1 }
0x169f   :  { %826 = vsyncpa [#allocation6], 1 }
0x16a0   :  { %827 = vsyncpa [#allocation4], 1 }
0x16a1   :  { %828 = vsyncpa [#allocation9], 1 }

</bundles_post_ra>
